<compile_context>
chip_gen: v7x
topology: tpu7x:2x2x1
jax: 0.10.0
libtpu: 0.0.40
codegen_flags: <defaults>
</compile_context>

<pallas_src>
import math
import functools

import jax
import jax.numpy as jnp
from jax.experimental import pallas as pl
from jax.experimental.pallas import tpu as pltpu


def _round_up(x, m):
    return ((x + m - 1) // m) * m


# ---------------------------------------------------------------------------
# Fused kernel: [Linear -> LayerNorm -> ReLU] * n_layers  ->  cls Linear
# ---------------------------------------------------------------------------
def _fused_classifier_kernel(*refs, n_layers, eps):
    # refs layout:
    #   refs[0]                      : x tile            (tb, F)    bf16
    #   refs[1 + 4*i : 5 + 4*i]      : w_i, b_i, g_i, beta_i   (layer i)
    #   refs[1 + 4*n_layers]         : cls weight         (H, C_pad) bf16
    #   refs[2 + 4*n_layers]         : cls bias           (1, C_pad) f32
    #   refs[-1]                     : output tile        (tb, C_pad) f32
    x_ref = refs[0]
    wc_ref = refs[1 + 4 * n_layers]
    bc_ref = refs[2 + 4 * n_layers]
    o_ref = refs[-1]

    h = x_ref[...]  # bf16 activations, kept VMEM/vreg-resident across layers
    for i in range(n_layers):
        w_ref, b_ref, g_ref, beta_ref = refs[1 + 4 * i: 5 + 4 * i]
        # Linear: bf16 x bf16 -> f32 accumulate on the MXU.
        z = jnp.dot(h, w_ref[...], preferred_element_type=jnp.float32)
        z = z + b_ref[...]
        # LayerNorm over the hidden axis (biased variance, like nn.LayerNorm),
        # all in f32; rsqrt goes to the EUP slot.
        mu = jnp.mean(z, axis=-1, keepdims=True)
        zc = z - mu
        var = jnp.mean(zc * zc, axis=-1, keepdims=True)
        zn = zc * jax.lax.rsqrt(var + eps)
        zn = zn * g_ref[...] + beta_ref[...]
        # ReLU, then back to bf16 for the next MXU matmul.
        h = jnp.maximum(zn, 0.0).astype(jnp.bfloat16)

    # cls head (output lanes are zero-padded to a multiple of 128).
    out = jnp.dot(h, wc_ref[...], preferred_element_type=jnp.float32)
    out = out + bc_ref[...]
    o_ref[...] = out.astype(o_ref.dtype)


# ---------------------------------------------------------------------------
# Wrapper: one pallas_call for the whole classifier
# ---------------------------------------------------------------------------
def classifier_forward(packed, x, *, tb=256, eps=1e-5,
                       vmem_limit_bytes=64 * 1024 * 1024):
    """Fused forward pass. `packed` comes from pack_params()."""
    B, F = x.shape
    layers = packed["layers"]            # [(w bf16 (in,H), b f32 (1,H), g, beta)]
    cls_w, cls_b = packed["cls"]         # (H, C_pad) bf16, (1, C_pad) f32
    n_classes = packed["n_classes"]
    n_layers = len(layers)
    C_pad = cls_w.shape[1]

    # Batch tiling: tile is 8-aligned (sublane), capped at the padded batch;
    # batch is padded to a multiple of the tile, padding sliced off at the end.
    tb = max(8, _round_up(min(tb, _round_up(B, 8)), 8))
    B_pad = _round_up(B, tb)

    x_bf = x.astype(jnp.bfloat16)
    if B_pad != B:
        x_bf = jnp.pad(x_bf, ((0, B_pad - B), (0, 0)))

    flat_inputs = [x_bf]
    in_specs = [pl.BlockSpec((tb, F), lambda i: (i, 0))]
    for (w, b, g, beta) in layers:
        flat_inputs += [w, b, g, beta]
        in_specs += [
            pl.BlockSpec(w.shape, lambda i: (0, 0)),
            pl.BlockSpec(b.shape, lambda i: (0, 0)),
            pl.BlockSpec(g.shape, lambda i: (0, 0)),
            pl.BlockSpec(beta.shape, lambda i: (0, 0)),
        ]
    flat_inputs += [cls_w, cls_b]
    in_specs += [
        pl.BlockSpec(cls_w.shape, lambda i: (0, 0)),
        pl.BlockSpec(cls_b.shape, lambda i: (0, 0)),
    ]

    # TODO(synk): for very large features_size (tens of thousands), add a
    # K-reduction grid axis ("arbitrary") with a VMEM f32 accumulator instead
    # of loading the full (F, hidden) weight block.
    kernel = functools.partial(_fused_classifier_kernel,
                               n_layers=n_layers, eps=eps)
    out = pl.pallas_call(
        kernel,
        out_shape=jax.ShapeDtypeStruct((B_pad, C_pad), jnp.float32),
        grid=(B_pad // tb,),
        in_specs=in_specs,
        out_specs=pl.BlockSpec((tb, C_pad), lambda i: (i, 0)),
        compiler_params=pltpu.CompilerParams(
            dimension_semantics=("parallel",),
            vmem_limit_bytes=vmem_limit_bytes,
        ),
    )(*flat_inputs)

    return out[:B, :n_classes]


# ---------------------------------------------------------------------------
# Parameter construction (mirrors the PyTorch __init__ shapes / init)
# ---------------------------------------------------------------------------
def init_classifier_params(key, features_size, n_classes, *, n_layers=2,
                           hidden_size=512, prior_prob=0.01, bias=True):
    params = {"layers": [], "n_classes": n_classes}
    in_dim = features_size
    for _ in range(n_layers):
        key, kw, kb = jax.random.split(key, 3)
        bound = 1.0 / math.sqrt(in_dim)
        w = jax.random.uniform(kw, (in_dim, hidden_size), jnp.float32, -bound, bound)
        b = jax.random.uniform(kb, (1, hidden_size), jnp.float32, -bound, bound)
        gamma = jnp.ones((1, hidden_size), jnp.float32)
        beta = jnp.zeros((1, hidden_size), jnp.float32)
        params["layers"].append((w, b, gamma, beta))
        in_dim = hidden_size
    key, kw, kb = jax.random.split(key, 3)
    bound = 1.0 / math.sqrt(hidden_size)
    cls_w = jax.random.uniform(kw, (hidden_size, n_classes), jnp.float32, -bound, bound)
    if bias and prior_prob > 0:
        bias_value = -math.log((1 - prior_prob) / prior_prob)
        cls_b = jnp.full((1, n_classes), bias_value, jnp.float32)
    else:
        cls_b = jax.random.uniform(kb, (1, n_classes), jnp.float32, -bound, bound)
    params["cls"] = (cls_w, cls_b)
    return params


def pack_params(params):
    """Cast matmul weights to bf16 and pad the cls head to 128 lanes."""
    n_classes = params["n_classes"]
    packed = {"layers": [], "n_classes": n_classes}
    for (w, b, g, beta) in params["layers"]:
        packed["layers"].append((w.astype(jnp.bfloat16), b, g, beta))
    cls_w, cls_b = params["cls"]
    C = cls_w.shape[1]
    C_pad = _round_up(C, 128)
    cls_w_p = jnp.pad(cls_w, ((0, 0), (0, C_pad - C))).astype(jnp.bfloat16)
    cls_b_p = jnp.pad(cls_b, ((0, 0), (0, C_pad - C)))
    packed["cls"] = (cls_w_p, cls_b_p)
    return packed


# ---------------------------------------------------------------------------
# Pure-JAX reference (same bf16-matmul / f32-accumulate numerics)
# ---------------------------------------------------------------------------
def classifier_forward_ref(packed, x, eps=1e-5):
    h = x.astype(jnp.bfloat16)
    for (w, b, g, beta) in packed["layers"]:
        z = jnp.dot(h, w, preferred_element_type=jnp.float32) + b
        mu = jnp.mean(z, axis=-1, keepdims=True)
        var = jnp.mean((z - mu) ** 2, axis=-1, keepdims=True)
        zn = (z - mu) * jax.lax.rsqrt(var + eps) * g + beta
        h = jnp.maximum(zn, 0.0).astype(jnp.bfloat16)
    cls_w, cls_b = packed["cls"]
    out = jnp.dot(h, cls_w, preferred_element_type=jnp.float32) + cls_b
    return out[:, :packed["n_classes"]]


if __name__ == "__main__":
    # Dropout with p=0 (module default) / inference is the identity.
    # TODO(synk): training-mode dropout (p>0) would need pltpu.prng_* masking.
    key = jax.random.PRNGKey(0)
    B, FEAT, HIDDEN, NCLS, NLAYERS = 32, 64, 128, 16, 2

    kx, kp = jax.random.split(key)
    x = jax.random.normal(kx, (B, FEAT), jnp.float32)
    raw = init_classifier_params(kp, FEAT, NCLS, n_layers=NLAYERS,
                                 hidden_size=HIDDEN, prior_prob=0.01, bias=True)
    packed = pack_params(raw)

    # tb=16 keeps >=2 grid steps at this toy batch (both v7x TensorCores busy);
    # at realistic batch sizes leave the default tb=256 (sweep 256/512/1024).
    out = classifier_forward(packed, x, tb=16)
    out = jax.block_until_ready(out)

    ref = classifier_forward_ref(packed, x)
    assert out.shape == (B, NCLS)
    assert jnp.allclose(out, ref, rtol=1e-2, atol=1e-2), "mismatch vs reference"

    # Ragged batch (exercises the pad-and-slice path).
    x2 = x[:19]
    out2 = jax.block_until_ready(classifier_forward(packed, x2, tb=16))
    ref2 = classifier_forward_ref(packed, x2)
    assert out2.shape == (19, NCLS)
    assert jnp.allclose(out2, ref2, rtol=1e-2, atol=1e-2), "ragged mismatch"

    print("KERNEL_OK")
</pallas_src>

<mosaic_0001>
module attributes {stable_mosaic.version = 11 : i64} {
  func.func @_fused_classifier_kernel(%arg0: i32, %arg1: memref<16x64xbf16, #tpu.memory_space<vmem>>, %arg2: memref<64x128xbf16, #tpu.memory_space<vmem>>, %arg3: memref<1x128xf32, #tpu.memory_space<vmem>>, %arg4: memref<1x128xf32, #tpu.memory_space<vmem>>, %arg5: memref<1x128xf32, #tpu.memory_space<vmem>>, %arg6: memref<128x128xbf16, #tpu.memory_space<vmem>>, %arg7: memref<1x128xf32, #tpu.memory_space<vmem>>, %arg8: memref<1x128xf32, #tpu.memory_space<vmem>>, %arg9: memref<1x128xf32, #tpu.memory_space<vmem>>, %arg10: memref<128x128xbf16, #tpu.memory_space<vmem>>, %arg11: memref<1x128xf32, #tpu.memory_space<vmem>>, %arg12: memref<16x128xf32, #tpu.memory_space<vmem>>) attributes {dimension_semantics = [#tpu.dimension_semantics<parallel>], iteration_bounds = array<i64: 2>, scalar_prefetch = 0 : i64, scratch_operands = 0 : i64, tpu.core_type = #tpu.core_type<tc>, window_params = [{transform_indices = @transform_0, window_bounds = array<i64: 16, 64>}, {pipeline_mode = #tpu.pipeline_mode<synchronous>, transform_indices = @transform_1, window_bounds = array<i64: 64, 128>}, {pipeline_mode = #tpu.pipeline_mode<synchronous>, transform_indices = @transform_2, window_bounds = array<i64: 1, 128>}, {pipeline_mode = #tpu.pipeline_mode<synchronous>, transform_indices = @transform_3, window_bounds = array<i64: 1, 128>}, {pipeline_mode = #tpu.pipeline_mode<synchronous>, transform_indices = @transform_4, window_bounds = array<i64: 1, 128>}, {pipeline_mode = #tpu.pipeline_mode<synchronous>, transform_indices = @transform_5, window_bounds = array<i64: 128, 128>}, {pipeline_mode = #tpu.pipeline_mode<synchronous>, transform_indices = @transform_6, window_bounds = array<i64: 1, 128>}, {pipeline_mode = #tpu.pipeline_mode<synchronous>, transform_indices = @transform_7, window_bounds = array<i64: 1, 128>}, {pipeline_mode = #tpu.pipeline_mode<synchronous>, transform_indices = @transform_8, window_bounds = array<i64: 1, 128>}, {pipeline_mode = #tpu.pipeline_mode<synchronous>, transform_indices = @transform_9, window_bounds = array<i64: 128, 128>}, {pipeline_mode = #tpu.pipeline_mode<synchronous>, transform_indices = @transform_10, window_bounds = array<i64: 1, 128>}, {transform_indices = @transform_11, window_bounds = array<i64: 16, 128>}]} {
    %c0 = arith.constant 0 : index
    %c0_0 = arith.constant 0 : index
    %0 = vector.load %arg1[%c0, %c0_0] : memref<16x64xbf16, #tpu.memory_space<vmem>>, vector<16x64xbf16>
    %c0_1 = arith.constant 0 : index
    %c0_2 = arith.constant 0 : index
    %1 = vector.load %arg2[%c0_1, %c0_2] : memref<64x128xbf16, #tpu.memory_space<vmem>>, vector<64x128xbf16>
    %cst = arith.constant dense<0.000000e+00> : vector<16x128xf32>
    %2 = tpu.matmul %0, %1, %cst {dimension_numbers = #tpu.dot_dimension_numbers<[1], [0], [0], [1], [0, 0, 1, 1], [], []>} : vector<16x64xbf16>, vector<64x128xbf16>, vector<16x128xf32> -> vector<16x128xf32>
    %c0_3 = arith.constant 0 : index
    %c0_4 = arith.constant 0 : index
    %3 = vector.load %arg3[%c0_3, %c0_4] : memref<1x128xf32, #tpu.memory_space<vmem>>, vector<1x128xf32>
    %4 = vector.broadcast %3 : vector<1x128xf32> to vector<16x128xf32>
    %5 = arith.addf %2, %4 : vector<16x128xf32>
    %cst_5 = arith.constant dense<0.000000e+00> : vector<16xf32>
    %6 = vector.multi_reduction <add>, %5, %cst_5 [1] : vector<16x128xf32> to vector<16xf32>
    %7 = vector.shape_cast %6 : vector<16xf32> to vector<16x1xf32>
    %cst_6 = arith.constant 1.280000e+02 : f32
    %8 = vector.broadcast %cst_6 : f32 to vector<16x1xf32>
    %9 = arith.divf %7, %8 : vector<16x1xf32>
    %10 = vector.broadcast %9 : vector<16x1xf32> to vector<16x128xf32>
    %11 = arith.subf %5, %10 : vector<16x128xf32>
    %12 = arith.mulf %11, %11 : vector<16x128xf32>
    %cst_7 = arith.constant dense<0.000000e+00> : vector<16xf32>
    %13 = vector.multi_reduction <add>, %12, %cst_7 [1] : vector<16x128xf32> to vector<16xf32>
    %14 = vector.shape_cast %13 : vector<16xf32> to vector<16x1xf32>
    %cst_8 = arith.constant 1.280000e+02 : f32
    %15 = vector.broadcast %cst_8 : f32 to vector<16x1xf32>
    %16 = arith.divf %14, %15 : vector<16x1xf32>
    %cst_9 = arith.constant 9.99999974E-6 : f32
    %17 = vector.broadcast %cst_9 : f32 to vector<16x1xf32>
    %18 = arith.addf %16, %17 : vector<16x1xf32>
    %19 = math.rsqrt %18 : vector<16x1xf32>
    %20 = vector.broadcast %19 : vector<16x1xf32> to vector<16x128xf32>
    %21 = arith.mulf %11, %20 : vector<16x128xf32>
    %c0_10 = arith.constant 0 : index
    %c0_11 = arith.constant 0 : index
    %22 = vector.load %arg4[%c0_10, %c0_11] : memref<1x128xf32, #tpu.memory_space<vmem>>, vector<1x128xf32>
    %23 = vector.broadcast %22 : vector<1x128xf32> to vector<16x128xf32>
    %24 = arith.mulf %21, %23 : vector<16x128xf32>
    %c0_12 = arith.constant 0 : index
    %c0_13 = arith.constant 0 : index
    %25 = vector.load %arg5[%c0_12, %c0_13] : memref<1x128xf32, #tpu.memory_space<vmem>>, vector<1x128xf32>
    %26 = vector.broadcast %25 : vector<1x128xf32> to vector<16x128xf32>
    %27 = arith.addf %24, %26 : vector<16x128xf32>
    %cst_14 = arith.constant 0.000000e+00 : f32
    %28 = vector.broadcast %cst_14 : f32 to vector<16x128xf32>
    %29 = arith.maximumf %27, %28 : vector<16x128xf32>
    %30 = arith.truncf %29 : vector<16x128xf32> to vector<16x128xbf16>
    %c0_15 = arith.constant 0 : index
    %c0_16 = arith.constant 0 : index
    %31 = vector.load %arg6[%c0_15, %c0_16] : memref<128x128xbf16, #tpu.memory_space<vmem>>, vector<128x128xbf16>
    %cst_17 = arith.constant dense<0.000000e+00> : vector<16x128xf32>
    %32 = tpu.matmul %30, %31, %cst_17 {dimension_numbers = #tpu.dot_dimension_numbers<[1], [0], [0], [1], [0, 0, 1, 1], [], []>} : vector<16x128xbf16>, vector<128x128xbf16>, vector<16x128xf32> -> vector<16x128xf32>
    %c0_18 = arith.constant 0 : index
    %c0_19 = arith.constant 0 : index
    %33 = vector.load %arg7[%c0_18, %c0_19] : memref<1x128xf32, #tpu.memory_space<vmem>>, vector<1x128xf32>
    %34 = vector.broadcast %33 : vector<1x128xf32> to vector<16x128xf32>
    %35 = arith.addf %32, %34 : vector<16x128xf32>
    %cst_20 = arith.constant dense<0.000000e+00> : vector<16xf32>
    %36 = vector.multi_reduction <add>, %35, %cst_20 [1] : vector<16x128xf32> to vector<16xf32>
    %37 = vector.shape_cast %36 : vector<16xf32> to vector<16x1xf32>
    %cst_21 = arith.constant 1.280000e+02 : f32
    %38 = vector.broadcast %cst_21 : f32 to vector<16x1xf32>
    %39 = arith.divf %37, %38 : vector<16x1xf32>
    %40 = vector.broadcast %39 : vector<16x1xf32> to vector<16x128xf32>
    %41 = arith.subf %35, %40 : vector<16x128xf32>
    %42 = arith.mulf %41, %41 : vector<16x128xf32>
    %cst_22 = arith.constant dense<0.000000e+00> : vector<16xf32>
    %43 = vector.multi_reduction <add>, %42, %cst_22 [1] : vector<16x128xf32> to vector<16xf32>
    %44 = vector.shape_cast %43 : vector<16xf32> to vector<16x1xf32>
    %cst_23 = arith.constant 1.280000e+02 : f32
    %45 = vector.broadcast %cst_23 : f32 to vector<16x1xf32>
    %46 = arith.divf %44, %45 : vector<16x1xf32>
    %cst_24 = arith.constant 9.99999974E-6 : f32
    %47 = vector.broadcast %cst_24 : f32 to vector<16x1xf32>
    %48 = arith.addf %46, %47 : vector<16x1xf32>
    %49 = math.rsqrt %48 : vector<16x1xf32>
    %50 = vector.broadcast %49 : vector<16x1xf32> to vector<16x128xf32>
    %51 = arith.mulf %41, %50 : vector<16x128xf32>
    %c0_25 = arith.constant 0 : index
    %c0_26 = arith.constant 0 : index
    %52 = vector.load %arg8[%c0_25, %c0_26] : memref<1x128xf32, #tpu.memory_space<vmem>>, vector<1x128xf32>
    %53 = vector.broadcast %52 : vector<1x128xf32> to vector<16x128xf32>
    %54 = arith.mulf %51, %53 : vector<16x128xf32>
    %c0_27 = arith.constant 0 : index
    %c0_28 = arith.constant 0 : index
    %55 = vector.load %arg9[%c0_27, %c0_28] : memref<1x128xf32, #tpu.memory_space<vmem>>, vector<1x128xf32>
    %56 = vector.broadcast %55 : vector<1x128xf32> to vector<16x128xf32>
    %57 = arith.addf %54, %56 : vector<16x128xf32>
    %cst_29 = arith.constant 0.000000e+00 : f32
    %58 = vector.broadcast %cst_29 : f32 to vector<16x128xf32>
    %59 = arith.maximumf %57, %58 : vector<16x128xf32>
    %60 = arith.truncf %59 : vector<16x128xf32> to vector<16x128xbf16>
    %c0_30 = arith.constant 0 : index
    %c0_31 = arith.constant 0 : index
    %61 = vector.load %arg10[%c0_30, %c0_31] : memref<128x128xbf16, #tpu.memory_space<vmem>>, vector<128x128xbf16>
    %cst_32 = arith.constant dense<0.000000e+00> : vector<16x128xf32>
    %62 = tpu.matmul %60, %61, %cst_32 {dimension_numbers = #tpu.dot_dimension_numbers<[1], [0], [0], [1], [0, 0, 1, 1], [], []>} : vector<16x128xbf16>, vector<128x128xbf16>, vector<16x128xf32> -> vector<16x128xf32>
    %c0_33 = arith.constant 0 : index
    %c0_34 = arith.constant 0 : index
    %63 = vector.load %arg11[%c0_33, %c0_34] : memref<1x128xf32, #tpu.memory_space<vmem>>, vector<1x128xf32>
    %64 = vector.broadcast %63 : vector<1x128xf32> to vector<16x128xf32>
    %65 = arith.addf %62, %64 : vector<16x128xf32>
    %c0_35 = arith.constant 0 : index
    %c0_36 = arith.constant 0 : index
    %66 = vector.load %arg12[%c0_35, %c0_36] : memref<16x128xf32, #tpu.memory_space<vmem>>, vector<16x128xf32>
    tpu.vector_store %arg12[%c0_35, %c0_36], %65 {strides = array<i32>} : memref<16x128xf32, #tpu.memory_space<vmem>>, vector<16x128xf32>,
    return
  }
  func.func @transform_0(%arg0: i32) -> (i32, i32) {
    %c0_i32 = arith.constant 0 : i32
    %c0_i32_0 = arith.constant 0 : i32
    return %arg0, %c0_i32 : i32, i32
  }
  func.func @transform_1(%arg0: i32) -> (i32, i32) {
    %c0_i32 = arith.constant 0 : i32
    %c0_i32_0 = arith.constant 0 : i32
    %c0_i32_1 = arith.constant 0 : i32
    return %c0_i32, %c0_i32_0 : i32, i32
  }
  func.func @transform_2(%arg0: i32) -> (i32, i32) {
    %c0_i32 = arith.constant 0 : i32
    %c0_i32_0 = arith.constant 0 : i32
    %c0_i32_1 = arith.constant 0 : i32
    return %c0_i32, %c0_i32_0 : i32, i32
  }
  func.func @transform_3(%arg0: i32) -> (i32, i32) {
    %c0_i32 = arith.constant 0 : i32
    %c0_i32_0 = arith.constant 0 : i32
    %c0_i32_1 = arith.constant 0 : i32
    return %c0_i32, %c0_i32_0 : i32, i32
  }
  func.func @transform_4(%arg0: i32) -> (i32, i32) {
    %c0_i32 = arith.constant 0 : i32
    %c0_i32_0 = arith.constant 0 : i32
    %c0_i32_1 = arith.constant 0 : i32
    return %c0_i32, %c0_i32_0 : i32, i32
  }
  func.func @transform_5(%arg0: i32) -> (i32, i32) {
    %c0_i32 = arith.constant 0 : i32
    %c0_i32_0 = arith.constant 0 : i32
    %c0_i32_1 = arith.constant 0 : i32
    return %c0_i32, %c0_i32_0 : i32, i32
  }
  func.func @transform_6(%arg0: i32) -> (i32, i32) {
    %c0_i32 = arith.constant 0 : i32
    %c0_i32_0 = arith.constant 0 : i32
    %c0_i32_1 = arith.constant 0 : i32
    return %c0_i32, %c0_i32_0 : i32, i32
  }
  func.func @transform_7(%arg0: i32) -> (i32, i32) {
    %c0_i32 = arith.constant 0 : i32
    %c0_i32_0 = arith.constant 0 : i32
    %c0_i32_1 = arith.constant 0 : i32
    return %c0_i32, %c0_i32_0 : i32, i32
  }
  func.func @transform_8(%arg0: i32) -> (i32, i32) {
    %c0_i32 = arith.constant 0 : i32
    %c0_i32_0 = arith.constant 0 : i32
    %c0_i32_1 = arith.constant 0 : i32
    return %c0_i32, %c0_i32_0 : i32, i32
  }
  func.func @transform_9(%arg0: i32) -> (i32, i32) {
    %c0_i32 = arith.constant 0 : i32
    %c0_i32_0 = arith.constant 0 : i32
    %c0_i32_1 = arith.constant 0 : i32
    return %c0_i32, %c0_i32_0 : i32, i32
  }
  func.func @transform_10(%arg0: i32) -> (i32, i32) {
    %c0_i32 = arith.constant 0 : i32
    %c0_i32_0 = arith.constant 0 : i32
    %c0_i32_1 = arith.constant 0 : i32
    return %c0_i32, %c0_i32_0 : i32, i32
  }
  func.func @transform_11(%arg0: i32) -> (i32, i32) {
    %c0_i32 = arith.constant 0 : i32
    %c0_i32_0 = arith.constant 0 : i32
    return %arg0, %c0_i32 : i32, i32
  }
}

</mosaic_0001>

<bundles_post_ra>
// kernel: tpu_custom_call.1
= control target key start
LH: loop header
LB: loop body
LE: loop exit
PB: predicated region body
PF: predicated region fallthrough
CT: control target
= control target key end

     0   :  { %s2368_s0 = inlined_call_operand.hbm [shape: bf16[32,64], index: 0, kind: input, shape index: {}]   ;;  %s2369_s1 = inlined_call_operand.hbm [shape: bf16[64,128], index: 1, kind: input, shape index: {}]   ;;  %s2370_s2 = inlined_call_operand.hbm [shape: f32[1,128], index: 2, kind: input, shape index: {}]   ;;  %s2371_s3 = inlined_call_operand.hbm [shape: f32[1,128], index: 3, kind: input, shape index: {}]   ;;  %s2372_s4 = inlined_call_operand.hbm [shape: f32[1,128], index: 4, kind: input, shape index: {}]   ;;  %s2373_s5 = inlined_call_operand.hbm [shape: bf16[128,128], index: 5, kind: input, shape index: {}]   ;;  %s2374_s6 = inlined_call_operand.hbm [shape: f32[1,128], index: 6, kind: input, shape index: {}]   ;;  %s2375_s7 = inlined_call_operand.hbm [shape: f32[1,128], index: 7, kind: input, shape index: {}]   ;;  %s2376_s8 = inlined_call_operand.hbm [shape: f32[1,128], index: 8, kind: input, shape index: {}]   ;;  %s2377_s9 = inlined_call_operand.hbm [shape: bf16[128,128], index: 9, kind: input, shape index: {}]   ;;  %s2378_s10 = inlined_call_operand.hbm [shape: f32[1,128], index: 10, kind: input, shape index: {}]   ;;  %s2379_s11 = inlined_call_operand.hbm [shape: f32[32,128], index: 11, kind: output, shape index: {}]  }
   0x1   :  { %2388 = sst [smem:[#allocation29_spill]] %s2368_s0 }
   0x2   :  { %2389 = sst [smem:[#allocation30_spill]] %s2369_s1 }
   0x3   :  { %2390 = sst [smem:[#allocation31_spill]] %s2379_s11 }
   0x4   :  { %16 = vsyncpa [#allocation3], 0 }
   0x5   :  { %18 = vsyncpa [#allocation3 + $0x1], 0 }
   0x6   :  { %19 = vsyncpa [#allocation6], 0 }
   0x7   :  { %20 = vsyncpa [#allocation9], 0 }
   0x8   :  { %21 = vsyncpa [#allocation12], 0 }
   0x9   :  { %22 = vsyncpa [#allocation15], 0 }
   0xa   :  { %23 = vsyncpa [#allocation18], 0 }
   0xb   :  { %24 = vsyncpa [#allocation4], 0 }
   0xc   :  { %26 = vsyncpa [#allocation4 + $0x1], 0  ;;  %s1923_s17 = smov 0   ;;  %s1925_s18 = smov 0  }
   0xd   :  { %s1927_s19 = smov 0   ;;  %s1929_s20 = smov 0  }
   0xe LB: > { %s1845_s21 = smov [#allocation5]   ;;  %s1944_s23 = sadd.s32 4294967295, %s1843_s20   ;;  %s1843_s20 = sphi %s1929_s20, %s2424_s20   ;;  %s1839_s19 = sphi %s1927_s19, %s2423_s19   ;;  %s1835_s18 = sphi %s1925_s18, %s2422_s18   ;;  %s1831_s17 = sphi %s1923_s17, %s2421_s17  }
   0xf   : > { %s311_s22 = sshll.u32 %s1845_s21, 4  ;;  %p1126_p0 = scmp.ge.s32.totalorder %s1843_s20, 1  ;;  %s1949_s22 = int_to_ptr.vmem [resolvable:$true] %s311_s22 }
  0x10   : > { %p2383_p1 = scmp.eq.s32.totalorder %s1944_s23, 0  ;;  %p299_p2 = scmp.lt.s32.totalorder %s1843_s20, 3 }
  0x11   : > { %s1846_s25 = smov [#allocation8]   ;;  %s1847_s28 = smov [#allocation11]  }
  0x12   : > { %p1951_p3 = pnand %p1126_p0, %p299_p2  ;;  %s336_s26 = sshll.u32 %s1846_s25, 4  ;;  %s1964_s26 = int_to_ptr.vmem [resolvable:$true] %s336_s26 }
  0x13   : > { %s357_s29 = sshll.u32 %s1847_s28, 4  ;;  %s2394_s1 = sld [smem:[#allocation30_spill]]  ;;  %s1966_s29 = int_to_ptr.vmem [resolvable:$true] %s357_s29 }
  0x14   : > { %s2391_s24 = scalar_select %p1951_p3, 1, 0 }
  0x15   : > { %p1309_p5 = pneg %p1951_p3 }
  0x16   : > { %2392 = sst [smem:[#allocation28_spill]] %s2391_s24 }
  0x17   : > { %p1960_p6 = pnand %p1309_p5, %p2383_p1 }
  0x19   : > { %s1447_s13 = scalar_lea.hbm %s2394_s1, 512  ;;  %p1976_p8 = pneg %p1960_p6 }
  0x1a   : > { %p1448_p7 = scmp.ne.s32.totalorder %s2394_s1, %s1447_s13  ;;  %p1454_p11 = scmp.lt.u32.totalorder %s1447_s13, %s2394_s1 }
  0x1c   : > { %p1450_p9 = pnand %p1976_p8, %p1448_p7 }
  0x1e   : > { %p1451_p10 = pneg %p1450_p9 }
  0x20   : > { %p1456_p12 = pnand %p1454_p11, %p1451_p10 }
  0x22   : > { %1459 = shalt.err (!%p1456_p12)
}
  0x23   : > { %s1460_s28 = scalar_lea.vmem %s1949_s22, 512  ;;  %p1468_p5 = scmp.lt.s32.totalorder %s1949_s22, %s1949_s22 }
  0x24   : > { %p1461_p13 = scmp.ne.s32.totalorder %s1949_s22, %s1460_s28  ;;  %p1469_p4 = scmp.lt.s32.totalorder %s1460_s28, %s1460_s28 }
  0x26   : > { %p1463_p0 = pnand %p1461_p13, %p1976_p8  ;;  %p1470_p7 = por %p1469_p4, %p1468_p5 }
  0x28   : > { %p1464_p2 = pneg %p1463_p0 }
  0x2a   : > { %p1471_p9 = pnand %p1470_p7, %p1464_p2 }
  0x2c   : > { %1474 = shalt.err (!%p1471_p9)
}
  0x2d   : > { %s2385_s30 = smov 64   ;;  %s2386_s12 = smov 4  }
  0x2e   : > { %1312 = dma.hbm_to_vmem [thread:$0]  (!%p1960_p6), %s2394_s1, 512, %s1949_s22, [#allocation6], %s2385_s30, %s2385_s30, %s2386_s12  }
  0x2f   : > { %s1475_s25 = scalar_lea.hbm %s2371_s3, 16 }
  0x30   : > { %p1476_p4 = scmp.ne.s32.totalorder %s2371_s3, %s1475_s25  ;;  %p1482_p12 = scmp.lt.u32.totalorder %s1475_s25, %s2371_s3 }
  0x32   : > { %p1478_p10 = pnand %p1476_p4, %p1976_p8 }
  0x34   : > { %p1479_p11 = pneg %p1478_p10 }
  0x36   : > { %p1484_p13 = pnand %p1482_p12, %p1479_p11 }
  0x38   : > { %1487 = shalt.err (!%p1484_p13)
}
  0x39   : > { %s1488_s22 = scalar_lea.vmem %s1964_s26, 16  ;;  %s1495_s11 = scalar_lea.vmem %s1964_s26, 32 }
  0x3a   : > { %p1489_p0 = scmp.ne.s32.totalorder %s1964_s26, %s1488_s22  ;;  %p1496_p7 = scmp.lt.s32.totalorder %s1964_s26, %s1964_s26 }
  0x3b   : > { %p1497_p9 = scmp.lt.s32.totalorder %s1495_s11, %s1488_s22 }
  0x3c   : > { %p1491_p2 = pnand %p1489_p0, %p1976_p8 }
  0x3d   : > { %p1498_p4 = por %p1497_p9, %p1496_p7 }
  0x3e   : > { %p1492_p5 = pneg %p1491_p2 }
  0x40   : > { %p1499_p10 = pnand %p1498_p4, %p1492_p5 }
  0x42   : > { %1502 = shalt.err (!%p1499_p10)
}
  0x43   : > { %1318 = dma.hbm_to_vmem [thread:$0]  (!%p1960_p6), %s2371_s3, 16, %s1964_s26, [#allocation9]  }
  0x44   : > { %s1503_s15 = scalar_lea.hbm %s2373_s5, 1024 }
  0x45   : > { %p1504_p11 = scmp.ne.s32.totalorder %s2373_s5, %s1503_s15  ;;  %p1510_p0 = scmp.lt.u32.totalorder %s1503_s15, %s2373_s5 }
  0x47   : > { %p1506_p12 = pnand %p1504_p11, %p1976_p8 }
  0x49   : > { %p1507_p13 = pneg %p1506_p12 }
  0x4b   : > { %p1512_p2 = pnand %p1510_p0, %p1507_p13 }
  0x4d   : > { %1515 = shalt.err (!%p1512_p2)
}
  0x4e   : > { %s1516_s26 = scalar_lea.vmem %s1966_s29, 1024  ;;  %p1524_p4 = scmp.lt.s32.totalorder %s1966_s29, %s1966_s29 }
  0x4f   : > { %p1517_p5 = scmp.ne.s32.totalorder %s1966_s29, %s1516_s26  ;;  %p1525_p10 = scmp.lt.s32.totalorder %s1516_s26, %s1516_s26 }
  0x51   : > { %p1519_p7 = pnand %p1517_p5, %p1976_p8  ;;  %p1526_p11 = por %p1525_p10, %p1524_p4 }
  0x53   : > { %p1520_p9 = pneg %p1519_p7 }
  0x55   : > { %p1527_p12 = pnand %p1526_p11, %p1520_p9 }
  0x57   : > { %1530 = shalt.err (!%p1527_p12)
}
  0x58   : > { %1324 = dma.hbm_to_vmem [thread:$0]  (!%p1960_p6), %s2373_s5, 1024, %s1966_s29, [#allocation12], %s2385_s30, %s2385_s30, %s2386_s12  }
  0x59   : > { %s1850_s24 = smov [#allocation14]   ;;  %s1851_s14 = smov [#allocation17]  }
  0x5a   : > { %s382_s13 = sshll.u32 %s1850_s24, 4  ;;  %s403_s15 = sshll.u32 %s1851_s14, 4  ;;  %s383_s13 = int_to_ptr.vmem [resolvable:$true] %s382_s13  ;;  %s404_s15 = int_to_ptr.vmem [resolvable:$true] %s403_s15 }
  0x5b   : > { %s1531_s28 = scalar_lea.hbm %s2375_s7, 16 }
  0x5c   : > { %p1532_p13 = scmp.ne.s32.totalorder %s2375_s7, %s1531_s28  ;;  %p1538_p5 = scmp.lt.u32.totalorder %s1531_s28, %s2375_s7 }
  0x5e   : > { %p1534_p0 = pnand %p1532_p13, %p1976_p8 }
  0x60   : > { %p1535_p2 = pneg %p1534_p0 }
  0x62   : > { %p1540_p7 = pnand %p1538_p5, %p1535_p2 }
  0x64   : > { %1543 = shalt.err (!%p1540_p7)
}
  0x65   : > { %s1544_s29 = scalar_lea.vmem %s383_s13, 16  ;;  %s1551_s0 = scalar_lea.vmem %s383_s13, 32 }
  0x66   : > { %p1545_p9 = scmp.ne.s32.totalorder %s383_s13, %s1544_s29  ;;  %p1552_p11 = scmp.lt.s32.totalorder %s383_s13, %s383_s13 }
  0x67   : > { %p1553_p12 = scmp.lt.s32.totalorder %s1551_s0, %s1544_s29 }
  0x68   : > { %p1547_p4 = pnand %p1545_p9, %p1976_p8 }
  0x69   : > { %p1554_p1 = por %p1553_p12, %p1552_p11 }
  0x6a   : > { %p1548_p10 = pneg %p1547_p4 }
  0x6c   : > { %p1555_p3 = pnand %p1554_p1, %p1548_p10 }
  0x6e   : > { %1558 = shalt.err (!%p1555_p3)
}
  0x6f   : > { %1330 = dma.hbm_to_vmem [thread:$0]  (!%p1960_p6), %s2375_s7, 16, %s383_s13, [#allocation15]  }
  0x70   : > { %s1559_s25 = scalar_lea.hbm %s2377_s9, 1024 }
  0x71   : > { %p1560_p13 = scmp.ne.s32.totalorder %s2377_s9, %s1559_s25  ;;  %p1566_p3 = scmp.lt.u32.totalorder %s1559_s25, %s2377_s9 }
  0x73   : > { %p1562_p0 = pnand %p1560_p13, %p1976_p8 }
  0x75   : > { %p1563_p1 = pneg %p1562_p0 }
  0x77   : > { %p1568_p2 = pnand %p1566_p3, %p1563_p1 }
  0x79   : > { %1571 = shalt.err (!%p1568_p2)
}
  0x7a   : > { %s1572_s29 = scalar_lea.vmem %s404_s15, 1024  ;;  %p1580_p4 = scmp.lt.s32.totalorder %s404_s15, %s404_s15 }
  0x7b   : > { %p1573_p5 = scmp.ne.s32.totalorder %s404_s15, %s1572_s29  ;;  %p1581_p10 = scmp.lt.s32.totalorder %s1572_s29, %s1572_s29 }
  0x7d   : > { %p1575_p7 = pnand %p1573_p5, %p1976_p8  ;;  %p1582_p11 = por %p1581_p10, %p1580_p4 }
  0x7f   : > { %p1576_p9 = pneg %p1575_p7 }
  0x81   : > { %p1583_p12 = pnand %p1582_p11, %p1576_p9 }
  0x83   : > { %1586 = shalt.err (!%p1583_p12)
}
  0x84   : > { %1336 = dma.hbm_to_vmem [thread:$0]  (!%p1960_p6), %s2377_s9, 1024, %s404_s15, [#allocation18], %s2385_s30, %s2385_s30, %s2386_s12  }
  0x85   : > { %s1852_s24 = smov [#allocation7]   ;;  %s1853_s1 = smov [#allocation10]  }
  0x86   : > { %s325_s14 = sshll.u32 %s1852_s24, 4  ;;  %s347_s21 = sshll.u32 %s1853_s1, 4  ;;  %s326_s14 = int_to_ptr.vmem [resolvable:$true] %s325_s14  ;;  %s348_s21 = int_to_ptr.vmem [resolvable:$true] %s347_s21 }
  0x87   : > { %s1587_s22 = scalar_lea.hbm %s2370_s2, 16 }
  0x88   : > { %p1588_p13 = scmp.ne.s32.totalorder %s2370_s2, %s1587_s22  ;;  %p1594_p3 = scmp.lt.u32.totalorder %s1587_s22, %s2370_s2 }
  0x8a   : > { %p1590_p0 = pnand %p1588_p13, %p1976_p8 }
  0x8c   : > { %p1591_p1 = pneg %p1590_p0 }
  0x8e   : > { %p1596_p2 = pnand %p1594_p3, %p1591_p1 }
  0x90   : > { %1599 = shalt.err (!%p1596_p2)
}
  0x91   : > { %s1600_s15 = scalar_lea.vmem %s326_s14, 16  ;;  %s1607_s0 = scalar_lea.vmem %s326_s14, 32 }
  0x92   : > { %p1601_p5 = scmp.ne.s32.totalorder %s326_s14, %s1600_s15  ;;  %p1608_p4 = scmp.lt.s32.totalorder %s326_s14, %s326_s14 }
  0x93   : > { %p1609_p10 = scmp.lt.s32.totalorder %s1607_s0, %s1600_s15 }
  0x94   : > { %p1603_p7 = pnand %p1601_p5, %p1976_p8 }
  0x95   : > { %p1610_p11 = por %p1609_p10, %p1608_p4 }
  0x96   : > { %p1604_p9 = pneg %p1603_p7 }
  0x98   : > { %p1611_p12 = pnand %p1610_p11, %p1604_p9 }
  0x9a   : > { %1614 = shalt.err (!%p1611_p12)
}
  0x9b   : > { %1315 = dma.hbm_to_vmem [thread:$0]  (!%p1960_p6), %s2370_s2, 16, %s326_s14, [#allocation6]  }
  0x9c   : > { %s1615_s22 = scalar_lea.hbm %s2372_s4, 16 }
  0x9d   : > { %p1616_p13 = scmp.ne.s32.totalorder %s2372_s4, %s1615_s22  ;;  %p1622_p3 = scmp.lt.u32.totalorder %s1615_s22, %s2372_s4 }
  0x9f   : > { %p1618_p0 = pnand %p1616_p13, %p1976_p8 }
  0xa1   : > { %p1619_p1 = pneg %p1618_p0 }
  0xa3   : > { %p1624_p2 = pnand %p1622_p3, %p1619_p1 }
  0xa5   : > { %1627 = shalt.err (!%p1624_p2)
}
  0xa6   : > { %s1628_s15 = scalar_lea.vmem %s348_s21, 16  ;;  %s1635_s14 = scalar_lea.vmem %s348_s21, 32 }
  0xa7   : > { %p1629_p5 = scmp.ne.s32.totalorder %s348_s21, %s1628_s15  ;;  %p1636_p4 = scmp.lt.s32.totalorder %s348_s21, %s348_s21 }
  0xa8   : > { %p1637_p10 = scmp.lt.s32.totalorder %s1635_s14, %s1628_s15 }
  0xa9   : > { %p1631_p7 = pnand %p1629_p5, %p1976_p8 }
  0xaa   : > { %p1638_p11 = por %p1637_p10, %p1636_p4 }
  0xab   : > { %p1632_p9 = pneg %p1631_p7 }
  0xad   : > { %p1639_p12 = pnand %p1638_p11, %p1632_p9 }
  0xaf   : > { %1642 = shalt.err (!%p1639_p12)
}
  0xb0   : > { %1321 = dma.hbm_to_vmem [thread:$0]  (!%p1960_p6), %s2372_s4, 16, %s348_s21, [#allocation9]  }
  0xb1   : > { %s1854_s1 = smov [#allocation13]   ;;  %s1855_s28 = smov [#allocation16]  }
  0xb2   : > { %s371_s25 = sshll.u32 %s1854_s1, 4  ;;  %s393_s22 = sshll.u32 %s1855_s28, 4  ;;  %s372_s25 = int_to_ptr.vmem [resolvable:$true] %s371_s25  ;;  %s394_s22 = int_to_ptr.vmem [resolvable:$true] %s393_s22 }
  0xb3   : > { %s1643_s29 = scalar_lea.hbm %s2374_s6, 16 }
  0xb4   : > { %p1644_p13 = scmp.ne.s32.totalorder %s2374_s6, %s1643_s29  ;;  %p1650_p3 = scmp.lt.u32.totalorder %s1643_s29, %s2374_s6 }
  0xb6   : > { %p1646_p0 = pnand %p1644_p13, %p1976_p8 }
  0xb8   : > { %p1647_p1 = pneg %p1646_p0 }
  0xba   : > { %p1652_p2 = pnand %p1650_p3, %p1647_p1 }
  0xbc   : > { %1655 = shalt.err (!%p1652_p2)
}
  0xbd   : > { %s1656_s21 = scalar_lea.vmem %s372_s25, 16  ;;  %s1663_s24 = scalar_lea.vmem %s372_s25, 32 }
  0xbe   : > { %p1657_p5 = scmp.ne.s32.totalorder %s372_s25, %s1656_s21  ;;  %p1664_p4 = scmp.lt.s32.totalorder %s372_s25, %s372_s25 }
  0xbf   : > { %p1665_p10 = scmp.lt.s32.totalorder %s1663_s24, %s1656_s21 }
  0xc0   : > { %p1659_p7 = pnand %p1657_p5, %p1976_p8 }
  0xc1   : > { %p1666_p11 = por %p1665_p10, %p1664_p4 }
  0xc2   : > { %p1660_p9 = pneg %p1659_p7 }
  0xc4   : > { %p1667_p12 = pnand %p1666_p11, %p1660_p9 }
  0xc6   : > { %1670 = shalt.err (!%p1667_p12)
}
  0xc7   : > { %1327 = dma.hbm_to_vmem [thread:$0]  (!%p1960_p6), %s2374_s6, 16, %s372_s25, [#allocation12]  }
  0xc8   : > { %s1671_s29 = scalar_lea.hbm %s2376_s8, 16 }
  0xc9   : > { %p1672_p13 = scmp.ne.s32.totalorder %s2376_s8, %s1671_s29  ;;  %p1678_p3 = scmp.lt.u32.totalorder %s1671_s29, %s2376_s8 }
  0xcb   : > { %p1674_p0 = pnand %p1672_p13, %p1976_p8 }
  0xcd   : > { %p1675_p1 = pneg %p1674_p0 }
  0xcf   : > { %p1680_p2 = pnand %p1678_p3, %p1675_p1 }
  0xd1   : > { %1683 = shalt.err (!%p1680_p2)
}
  0xd2   : > { %s1684_s21 = scalar_lea.vmem %s394_s22, 16  ;;  %s1691_s25 = scalar_lea.vmem %s394_s22, 32 }
  0xd3   : > { %p1685_p5 = scmp.ne.s32.totalorder %s394_s22, %s1684_s21  ;;  %p1692_p4 = scmp.lt.s32.totalorder %s394_s22, %s394_s22 }
  0xd4   : > { %p1693_p10 = scmp.lt.s32.totalorder %s1691_s25, %s1684_s21 }
  0xd5   : > { %p1687_p7 = pnand %p1685_p5, %p1976_p8 }
  0xd6   : > { %p1694_p11 = por %p1693_p10, %p1692_p4 }
  0xd7   : > { %p1688_p9 = pneg %p1687_p7 }
  0xd9   : > { %p1695_p12 = pnand %p1694_p11, %p1688_p9 }
  0xdb   : > { %1698 = shalt.err (!%p1695_p12)
}
  0xdc   : > { %1333 = dma.hbm_to_vmem [thread:$0]  (!%p1960_p6), %s2376_s8, 16, %s394_s22, [#allocation15]  }
  0xdd   : > { %s1856_s28 = smov [#allocation19]   ;;  %s1699_s13 = scalar_lea.hbm %s2378_s10, 16 }
  0xde   : > { %s417_s26 = sshll.u32 %s1856_s28, 4  ;;  %p1700_p13 = scmp.ne.s32.totalorder %s2378_s10, %s1699_s13  ;;  %s418_s26 = int_to_ptr.vmem [resolvable:$true] %s417_s26 }
  0xdf   : > { %p1706_p3 = scmp.lt.u32.totalorder %s1699_s13, %s2378_s10 }
  0xe0   : > { %p1702_p0 = pnand %p1700_p13, %p1976_p8 }
  0xe2   : > { %p1703_p1 = pneg %p1702_p0 }
  0xe4   : > { %p1708_p2 = pnand %p1706_p3, %p1703_p1 }
  0xe6   : > { %1711 = shalt.err (!%p1708_p2)
}
  0xe7   : > { %s1712_s22 = scalar_lea.vmem %s418_s26, 16  ;;  %s1719_s25 = scalar_lea.vmem %s418_s26, 32 }
  0xe8   : > { %p1713_p5 = scmp.ne.s32.totalorder %s418_s26, %s1712_s22  ;;  %p1720_p4 = scmp.lt.s32.totalorder %s418_s26, %s418_s26 }
  0xe9   : > { %p1721_p10 = scmp.lt.s32.totalorder %s1719_s25, %s1712_s22 }
  0xea   : > { %p1715_p7 = pnand %p1713_p5, %p1976_p8 }
  0xeb   : > { %p1722_p11 = por %p1721_p10, %p1720_p4 }
  0xec   : > { %p1716_p9 = pneg %p1715_p7 }
  0xee   : > { %p1723_p12 = pnand %p1722_p11, %p1716_p9 }
  0xf0   : > { %1726 = shalt.err (!%p1723_p12)
}
  0xf1   : > { %1339 = dma.hbm_to_vmem [thread:$0]  (!%p1960_p6), %s2378_s10, 16, %s418_s26, [#allocation18]  }
  0xf2   : > { %s1125_s16 = sadd.s32 4294967294, %s1843_s20   ;;  %s2181_s27 = sadd.s32 1, %s1843_s20  }
  0xf3   : > { %s36_s28 = ssub.s32 %s1843_s20, %s2181_s27  ;;  %s39_s11 = sadd.s32 1, %s1839_s19 }
  0xf4   : > { %p37_p8 = scmp.eq.s32.totalorder %s36_s28, 0  ;;  %p46_p13 = scmp.ne.s32.totalorder %s1839_s19, %s1835_s18 }
  0xf5   : > { %p47_p0 = scmp.eq.s32.totalorder %s1843_s20, 0  ;;  %p52_p1 = scmp.ne.s32.totalorder %s1835_s18, %s1831_s17 }
  0xf6   : > { %s2192_s29 = scalar_select %p37_p8, %s1839_s19, %s39_s11  }
  0xf7   : > { %p2194_p3 = por %p47_p0, %p46_p13  ;;  %p2397_p2 = scmp.eq.s32.totalorder %s1944_s23, 0 }
  0xf8   : > { %p286_p5 = scmp.eq.s32.totalorder %s1944_s23, 1  ;;  %p292_p7 = scmp.eq.s32.totalorder %s1125_s16, 1 }
  0xf9   : > { %p2200_p6 = por %p2397_p2, %p52_p1  ;;  %p1358_p9 = scmp.lt.s32.totalorder %s1843_s20, 2 }
  0xfa   : > { %s428_s15 = sand.u32 1, %s1839_s19   ;;  %p2207_p4 = por %p286_p5, %p46_p13 }
  0xfb   : > { %p2211_p10 = por %p292_p7, %p52_p1  ;;  %s1138_s21 = sshll.u32 %s428_s15, 3 }
  0xfc   : > { %s2399_s14 = scalar_select %p2207_p4, 1, 0 }
  0xfd   : > { %s2400_s0 = scalar_select %p2211_p10, 1, 0 }
  0xfe   : > { %s1188_s22 = sshll.u32 %s1843_s20, 7  ;;  %s2401_s1 = sld [smem:[#allocation29_spill]] }
  0xff   : > { %s432_s16 = scalar_lea.vmem [#allocation2], %s1138_s21  ;;  %p2225_p11 = pnand %p1358_p9, %p2194_p3 }
 0x100   : > { %s439_s11 = sshll.u32 %s432_s16, 4  ;;  %s2229_s12 = scalar_lea.sflag [#allocation3], %s428_s15  ;;  %s2221_s11 = int_to_ptr.vmem [resolvable:$true] %s439_s11 }
 0x101   : > { %p1729_p8 = pneg %p2225_p11 }
 0x104   : > { %s2219_s28 = scalar_lea.hbm %s2401_s1, %s1188_s22  ;;  %s1732_s13 = scalar_lea.hbm %s2401_s1, 256 }
 0x105   : > { %s1727_s25 = scalar_lea.hbm %s2219_s28, 128  ;;  %p1733_p1 = scmp.lt.u32.totalorder %s2219_s28, %s2401_s1 }
 0x106   : > { %p1728_p12 = scmp.ne.s32.totalorder %s2219_s28, %s1727_s25  ;;  %p1734_p3 = scmp.lt.u32.totalorder %s1732_s13, %s1727_s25 }
 0x107   : > { %p1736_p5 = scmp.lt.u32.totalorder %s1727_s25, %s2219_s28 }
 0x108   : > { %p1730_p13 = pnand %p1729_p8, %p1728_p12  ;;  %p1735_p2 = por %p1734_p3, %p1733_p1 }
 0x10a   : > { %p1731_p0 = pneg %p1730_p13  ;;  %p1737_p7 = por %p1736_p5, %p1735_p2 }
 0x10c   : > { %p1738_p9 = pnand %p1737_p7, %p1731_p0 }
 0x10e   : > { %1741 = shalt.err (!%p1738_p9)
}
 0x10f   : > { %s1742_s15 = scalar_lea.vmem %s2221_s11, 128  ;;  %s1857_s21 = smov [#allocation2]  }
 0x110   : > { %p1743_p12 = scmp.ne.s32.totalorder %s2221_s11, %s1742_s15  ;;  %s1747_s22 = sshll.u32 %s1857_s21, 4  ;;  %s1748_s22 = int_to_ptr.vmem [resolvable:$false] %s1747_s22 }
 0x111   : > { %s1749_s24 = scalar_lea.vmem %s1748_s22, 256  ;;  %p1750_p4 = scmp.lt.s32.totalorder %s2221_s11, %s1748_s22 }
 0x112   : > { %p1745_p13 = pnand %p1743_p12, %p1729_p8  ;;  %p1751_p1 = scmp.lt.s32.totalorder %s1749_s24, %s1742_s15 }
 0x114   : > { %p1746_p10 = pneg %p1745_p13  ;;  %p1752_p3 = por %p1751_p1, %p1750_p4 }
 0x116   : > { %p1753_p2 = pnand %p1752_p3, %p1746_p10 }
 0x118   : > { %1756 = shalt.err (!%p1753_p2)
}
 0x119   : > { %s2403_s25 = smov 4   ;;  %s2404_s13 = smov 64  }
 0x11a   : > { %1343 = dma.hbm_to_vmem [thread:$0]  (!%p2225_p11), %s2219_s28, 128, %s2221_s11, %s2229_s12, %s2404_s13, %s2404_s13, %s2403_s25  }
 0x11b   : > { %s2405_s16 = sld [smem:[#allocation28_spill]] }
 0x121   : > { %p2406_p8 = scmp.ne.s32.totalorder %s2405_s16, 0 }
 0x122   : > { %s2263_s21 = sand.u32 (!%p2406_p8), 1, %s1835_s18  }
 0x123   : > { %451 = sbr.rel (%p2406_p8) target bundleno = 1628 (0x65c), region = 64  ;;  %s1142_s15 = sshll.u32 (!%p2406_p8), %s2263_s21, 3 }
 0x124   : > { %s454_s22 = scalar_lea.sflag (!%p2406_p8), [#allocation3], %s2263_s21  ;;  %s457_s24 = scalar_lea.vmem (!%p2406_p8), [#allocation2], %s1142_s15 }
 0x12a   : > { %1802 = dma.done.wait (%p2200_p6), %s454_s22, 128  }
 0x12b   : > { %1804 = vsyncadd (%p2200_p6), %s454_s22, 4294967168  ;;  %p2407_p4 = scmp.eq.s32.totalorder %s1944_s23, 0 }
 0x12d   : > { %1806 = dma.done.wait (%p2407_p4), [#allocation6], 528   ;;  %p2408_p10 = pmov %p2407_p4 }
 0x12e   : > { %p2409_p11 = pmov %p2407_p4 }
 0x12f   : > { %1808 = vsyncadd (%p2408_p10), [#allocation6], 4294966768 }
 0x130   : > { %1810 = dma.done.wait (%p2409_p11), [#allocation9], 32   ;;  %p2410_p0 = pmov %p2407_p4 }
 0x132   : > { %1812 = vsyncadd (%p2410_p0), [#allocation9], 4294967264  ;;  %p2411_p5 = pmov %p2410_p0 }
 0x133   : > { %p2412_p7 = pmov %p2410_p0 }
 0x134   : > { %1814 = dma.done.wait (%p2411_p5), [#allocation12], 1040  }
 0x135   : > { %1816 = vsyncadd (%p2412_p7), [#allocation12], 4294966256  ;;  %p2413_p6 = pmov %p2410_p0 }
 0x136   : > { %p2414_p9 = pmov %p2410_p0 }
 0x137   : > { %1818 = dma.done.wait (%p2413_p6), [#allocation15], 32  }
 0x138   : > { %1820 = vsyncadd (%p2414_p9), [#allocation15], 4294967264  ;;  %p2415_p12 = pmov %p2410_p0 }
 0x139   : > { %p2416_p13 = pmov %p2410_p0 }
 0x13a   : > { %1822 = dma.done.wait (%p2415_p12), [#allocation18], 1040  }
 0x13b   : > { %1824 = vsyncadd (%p2416_p13), [#allocation18], 4294966256  ;;  %v1858_v0 = vmov 0.0   ;;  %vm1859_vm0 = vmmov 0   ;;  %v1418_v1 = vld [vmem:[#allocation5] sm:$0xff]   ;;  %v1419_v2 = vld [vmem:[#allocation5 + $0x8] sm:$0xff]  }
 0x13c   : > { %1213 = vmatprep.subr.bf16.mxu0 %v1858_v0  ;;  %1221 = vmatprep.mubr.msk.bf16.mxu0 %vm1859_vm0, %v1858_v0  ;;  %v1420_v3 = vld [vmem:[#allocation5 + $0x10] sm:$0xff]   ;;  %vm585_vm1 = vcmask 523264   ;;  %v1421_v4 = vld [vmem:[#allocation5 + $0x18] sm:$0xff]   ;;  %v1154_v6 = vld [vmem:[#allocation7] ss:$0 sm:$0xff]  ;;  %s1153_s30 = sshll.u32 %s2263_s21, 4 }
 0x13d   : > { %1225 = vmatprep.subr.bf16.mxu1 %v1858_v0  ;;  %1241 = vmatprep.mubr.msk.bf16.mxu1 %vm1859_vm0, %v1858_v0  ;;  %v1422_v5 = vld [vmem:[%s457_s24] sm:$0xff]   ;;  %v1423_v13 = vld [vmem:[#allocation11] sm:$0xff]   ;;  %v1161_v36 = vld [vmem:[#allocation8] ss:$0 sm:$0xff]  ;;  %s535_s12 = scalar_lea.vmem [#allocation20], %s1153_s30  ;;  %s1189_s28 = sshll.u32 %s1944_s23, 8 }
 0x13e   : > { %1214 = vmatpush3.bf16.msra.mxu0 %v1418_v1  ;;  %1226 = vmatpush3.bf16.msra.mxu1 %v1423_v13  ;;  %v1424_v22 = vld [vmem:[#allocation11 + $0x8] sm:$0xff]   ;;  %v1425_v23 = vld [vmem:[#allocation11 + $0x10] sm:$0xff]   ;;  %v1426_v24 = vld [vmem:[#allocation11 + $0x18] sm:$0xff]   ;;  %s957_s26 = sshll.u32 %s535_s12, 4  ;;  %s2417_s13 = sld [smem:[#allocation31_spill]]  ;;  %s2319_s26 = int_to_ptr.vmem [resolvable:$true] %s957_s26 }
 0x13f   : > { %1215 = vmatprep.subr.bf16.mxu0 %v1858_v0  ;;  %1227 = vmatprep.subr.bf16.mxu1 %v1858_v0  ;;  %v1427_v25 = vld [vmem:[#allocation11 + $0x20] sm:$0xff]   ;;  %v1428_v26 = vld [vmem:[#allocation11 + $0x28] sm:$0xff]   ;;  %v1429_v27 = vld [vmem:[#allocation11 + $0x30] sm:$0xff]   ;;  %s944_s15 = scalar_lea.sflag [#allocation4], %s2263_s21  ;;  %s1757_s23 = scalar_lea.vmem %s2319_s26, 256 }
 0x140   : > { %v1430_v28 = vld [vmem:[#allocation11 + $0x38] sm:$0xff]   ;;  %v1163_v48 = vld [vmem:[#allocation13] ss:$0 sm:$0xff]  ;;  %v1431_v55 = vld [vmem:[#allocation17] sm:$0xff]   ;;  %p1758_p1 = scmp.ne.s32.totalorder %s2319_s26, %s1757_s23  ;;  %p2418_p3 = scmp.ne.s32.totalorder %s2399_s14, 0 }
 0x141   : > { %v1162_v40 = vld [vmem:[#allocation10] ss:$0 sm:$0xff]  ;;  %v1432_v1 = vld [vmem:[#allocation17 + $0x8] sm:$0xff]   ;;  %s1860_s22 = smov [#allocation20]  }
 0x142   : > { %1216 = vmatpush3.bf16.msra.mxu0 %v1419_v2  ;;  %1228 = vmatpush3.bf16.msra.mxu1 %v1424_v22  ;;  %v1433_v2 = vld [vmem:[#allocation17 + $0x10] sm:$0xff]   ;;  %p1759_p2 = pnand %p1758_p1, %p2418_p3  ;;  %s1761_s24 = sshll.u32 %s1860_s22, 4  ;;  %s1762_s24 = int_to_ptr.vmem [resolvable:$false] %s1761_s24 }
 0x143   : > { %1217 = vmatprep.subr.bf16.mxu0 %v1858_v0  ;;  %1229 = vmatprep.subr.bf16.mxu1 %v1858_v0  ;;  %s1763_s30 = scalar_lea.vmem %s1762_s24, 512  ;;  %p1764_p4 = scmp.lt.s32.totalorder %s2319_s26, %s1762_s24 }
 0x144   : > { %s2324_s16 = scalar_lea.hbm %s2417_s13, %s1189_s28  ;;  %p1760_p8 = pneg %p1759_p2 }
 0x145   : > { %p1765_p10 = scmp.lt.s32.totalorder %s1763_s30, %s1757_s23 }
 0x146   : > { %1218 = vmatpush3.bf16.msra.mxu0 %v1420_v3  ;;  %1230 = vmatpush3.bf16.msra.mxu1 %v1425_v23  ;;  %v1434_v3 = vld [vmem:[#allocation17 + $0x18] sm:$0xff]  }
 0x147   : > { %1219 = vmatprep.subr.bf16.mxu0 %v1858_v0  ;;  %1231 = vmatprep.subr.bf16.mxu1 %v1858_v0  ;;  %p1766_p11 = por %p1765_p10, %p1764_p4 }
 0x149   : > { %p1767_p0 = pnand %p1766_p11, %p1760_p8 }
 0x14a   : > { %1220 = vmatpush3.bf16.msra.mxu0 %v1421_v4  ;;  %1232 = vmatpush3.bf16.msra.mxu1 %v1426_v24  ;;  %v1435_v4 = vld [vmem:[#allocation17 + $0x20] sm:$0xff]  }
 0x14b   : > { %1245 = vmatprep.subr.bf16.mxu0 %v1858_v0  ;;  %1233 = vmatprep.subr.bf16.mxu1 %v1858_v0 }
 0x14d   : > { %1222 = vmatmul.mubr.msk.bf16.vlgmr.msra.gmra.mrb[0].mxu0 %vm585_vm1, %v1422_v5  ;;  %v1436_v5 = vld [vmem:[#allocation17 + $0x28] sm:$0xff]  }
 0x14e   : > { %1261 = vmatprep.mubr.msk.bf16.mxu0 %vm1859_vm0, %v1858_v0  ;;  %1234 = vmatpush3.bf16.msra.mxu1 %v1427_v25 }
 0x14f   : > { %1235 = vmatprep.subr.bf16.mxu1 %v1858_v0  ;;  %1246 = vmatpush3.bf16.msra.mxu0 %v1431_v55 }
 0x150   : > { %1247 = vmatprep.subr.bf16.mxu0 %v1858_v0 }
 0x152   : > { %1236 = vmatpush3.bf16.msra.mxu1 %v1428_v26  ;;  %v1174_v26 = vld [vmem:[#allocation19] ss:$0 sm:$0xff] }
 0x153   : > { %1237 = vmatprep.subr.bf16.mxu1 %v1858_v0  ;;  %1248 = vmatpush3.bf16.msra.mxu0 %v1432_v1 }
 0x154   : > { %1249 = vmatprep.subr.bf16.mxu0 %v1858_v0 }
 0x156   : > { %1238 = vmatpush3.bf16.msra.mxu1 %v1429_v27 }
 0x157   : > { %1239 = vmatprep.subr.bf16.mxu1 %v1858_v0  ;;  %1250 = vmatpush3.bf16.msra.mxu0 %v1433_v2 }
 0x158   : > { %1251 = vmatprep.subr.bf16.mxu0 %v1858_v0 }
 0x15a   : > { %1240 = vmatpush3.bf16.msra.mxu1 %v1430_v28 }
 0x15b   : > { %1252 = vmatpush3.bf16.msra.mxu0 %v1434_v3 }
 0x15c   : > { %1253 = vmatprep.subr.bf16.mxu0 %v1858_v0 }
 0x15f   : > { %1254 = vmatpush3.bf16.msra.mxu0 %v1435_v4 }
 0x160   : > { %1255 = vmatprep.subr.bf16.mxu0 %v1858_v0 }
 0x163   : > { %1256 = vmatpush3.bf16.msra.mxu0 %v1436_v5 }
 0x164   : > { %1257 = vmatprep.subr.bf16.mxu0 %v1858_v0 }
 0x220   : > { %v623_v7 = vpop.f32.mrb[0].mxu0 }
 0x221   : > { %v624_v8 = vadd.f32 %v1154_v6, %v623_v7  ;;  %v1223_v9 = vpop.f32.mrb[1].mxu0  ;;  %v1438_v7 = vld [vmem:[#allocation17 + $0x38] sm:$0xff]  }
 0x222   : > { %v626_v10 = vpop.f32.mrb[2].mxu0 }
 0x223   : > { %630 = vadd.xlane.f32.xlu0 %v624_v8  ;;  %v1224_v11 = vpop.f32.mrb[3].mxu0  ;;  %v627_v12 = vadd.f32 %v1154_v6, %v626_v10  ;;  %v1437_v6 = vld [vmem:[#allocation17 + $0x30] sm:$0xff]  }
 0x224   : > { %1258 = vmatpush3.bf16.msra.mxu0 %v1437_v6 }
 0x225   : > { %1259 = vmatprep.subr.bf16.mxu0 %v1858_v0 }
 0x227   : > { %632 = vadd.xlane.f32.xlu0 %v627_v12 }
 0x228   : > { %1260 = vmatpush3.bf16.msra.mxu0 %v1438_v7 }
 0x2b0   : > { %v631_v14 = vpop.xlane.xlu0 %630 }
 0x2b1   : > { %v635_v15 = vmul.f32 0.0078125, %v631_v14 }
 0x2b3   : > { %v637_v16 = vsub.f32 %v624_v8, %v635_v15  ;;  %v1172_v15 = vld [vmem:[#allocation14] ss:$0 sm:$0xff] }
 0x2b4   : > { %v633_v17 = vpop.xlane.xlu0 %632 }
 0x2b5   : > { %v636_v18 = vmul.f32 0.0078125, %v633_v17  ;;  %v639_v19 = vmul.f32 %v637_v16, %v637_v16 }
 0x2b7   : > { %v638_v20 = vsub.f32 %v627_v12, %v636_v18  ;;  %641 = vadd.xlane.f32.xlu1 %v639_v19  ;;  %v1173_v18 = vld [vmem:[#allocation16] ss:$0 sm:$0xff] }
 0x2b9   : > { %v640_v21 = vmul.f32 %v638_v20, %v638_v20 }
 0x2bb   : > { %643 = vadd.xlane.f32.xlu1 %v640_v21 }
 0x344   : > { %v642_v29 = vpop.xlane.xlu1 %641 }
 0x345   : > { %v645_v30 = vmul.f32 0.0078125, %v642_v29 }
 0x347   : > { %v647_v31 = vadd.f32 1e-05, %v645_v30 }
 0x348   : > { %v644_v32 = vpop.xlane.xlu1 %643 }
 0x349   : > { %1439 = vrsqrt.f32 %v647_v31  ;;  %v646_v33 = vmul.f32 0.0078125, %v644_v32 }
 0x34b   : > { %v648_v34 = vadd.f32 1e-05, %v646_v33 }
 0x34d   : > { %1441 = vrsqrt.f32 %v648_v34 }
 0x353   : > { %v1440_v35 = vpop.eup %1439 }
 0x354   : > { %v651_v37 = vmul.f32 %v1440_v35, %v637_v16 }
 0x356   : > { %v660_v38 = vmul.f32 %v1161_v36, %v651_v37 }
 0x357   : > { %v1442_v39 = vpop.eup %1441 }
 0x358   : > { %v652_v41 = vmul.f32 %v1442_v39, %v638_v20  ;;  %v669_v43 = vadd.f32 %v1162_v40, %v660_v38 }
 0x35a   : > { %v661_v42 = vmul.f32 %v1161_v36, %v652_v41  ;;  %v671_v45 = vmax.f32 %v669_v43, 0.0 }
 0x35c   : > { %v670_v44 = vadd.f32 %v1162_v40, %v661_v42 }
 0x35e   : > { %v672_v46 = vmax.f32 %v670_v44, 0.0 }
 0x360   : > { %v673_v47 = vpack.c.bf16 %v672_v46, %v671_v45 }
 0x362   : > { %1242 = vmatmul.mubr.bf16.vlgmr.msra.gmra.mrb[0].mxu1 %v673_v47 }
 0x435   : > { %v779_v49 = vpop.f32.mrb[0].mxu1 }
 0x436   : > { %v780_v50 = vadd.f32 %v1163_v48, %v779_v49  ;;  %v1243_v51 = vpop.f32.mrb[1].mxu1 }
 0x437   : > { %v782_v52 = vpop.f32.mrb[2].mxu1 }
 0x438   : > { %v783_v53 = vadd.f32 %v1163_v48, %v782_v52  ;;  %786 = vadd.xlane.f32.xlu0 %v780_v50  ;;  %v1244_v54 = vpop.f32.mrb[3].mxu1 }
 0x43a   : > { %788 = vadd.xlane.f32.xlu1 %v783_v53 }
 0x4c5   : > { %v787_v56 = vpop.xlane.xlu0 %786 }
 0x4c6   : > { %v790_v57 = vmul.f32 0.0078125, %v787_v56 }
 0x4c7   : > { %v789_v58 = vpop.xlane.xlu1 %788 }
 0x4c8   : > { %v792_v59 = vsub.f32 %v780_v50, %v790_v57  ;;  %v791_v60 = vmul.f32 0.0078125, %v789_v58 }
 0x4ca   : > { %v793_v61 = vsub.f32 %v783_v53, %v791_v60  ;;  %v794_v62 = vmul.f32 %v792_v59, %v792_v59 }
 0x4cc   : > { %796 = vadd.xlane.f32.xlu0 %v794_v62  ;;  %v795_v63 = vmul.f32 %v793_v61, %v793_v61 }
 0x4ce   : > { %798 = vadd.xlane.f32.xlu1 %v795_v63 }
 0x559   : > { %v797_v8 = vpop.xlane.xlu0 %796 }
 0x55a   : > { %v800_v9 = vmul.f32 0.0078125, %v797_v8 }
 0x55b   : > { %v799_v10 = vpop.xlane.xlu1 %798 }
 0x55c   : > { %v802_v11 = vadd.f32 1e-05, %v800_v9  ;;  %v801_v12 = vmul.f32 0.0078125, %v799_v10 }
 0x55e   : > { %1443 = vrsqrt.f32 %v802_v11  ;;  %v803_v13 = vadd.f32 1e-05, %v801_v12 }
 0x560   : > { %1445 = vrsqrt.f32 %v803_v13 }
 0x568   : > { %v1444_v14 = vpop.eup %1443 }
 0x569   : > { %v806_v16 = vmul.f32 %v1444_v14, %v792_v59 }
 0x56a   : > { %v1446_v17 = vpop.eup %1445 }
 0x56b   : > { %v807_v19 = vmul.f32 %v1446_v17, %v793_v61  ;;  %v815_v20 = vmul.f32 %v1172_v15, %v806_v16 }
 0x56d   : > { %v816_v21 = vmul.f32 %v1172_v15, %v807_v19  ;;  %v824_v0 = vadd.f32 %v1173_v18, %v815_v20 }
 0x56f   : > { %v825_v22 = vadd.f32 %v1173_v18, %v816_v21  ;;  %v826_v23 = vmax.f32 %v824_v0, 0.0 }
 0x571   : > { %v827_v24 = vmax.f32 %v825_v22, 0.0 }
 0x573   : > { %v828_v25 = vpack.c.bf16 %v827_v24, %v826_v23 }
 0x575   : > { %1262 = vmatmul.mubr.bf16.vlgmr.msra.gmra.mrb[4].mxu0 %v828_v25 }
 0x648   : > { %v934_v27 = vpop.f32.mrb[4].mxu0 }
 0x649   : > { %v935_v28 = vadd.f32 %v1174_v26, %v934_v27  ;;  %v1263_v29 = vpop.f32.mrb[5].mxu0 }
 0x64a   : > { %v937_v30 = vpop.f32.mrb[6].mxu0 }
 0x64b   : > { %941 = vst [vmem:[%s535_s12] sm:$0xff] %v935_v28  ;;  %v938_v31 = vadd.f32 %v1174_v26, %v937_v30  ;;  %v1264_v32 = vpop.f32.mrb[7].mxu0 }
 0x64d   : > { %942 = vst [vmem:[%s535_s12 + $0x8] sm:$0xff] %v938_v31 }
 0x64e   : > { %1770 = shalt.err (!%p1767_p0)
}
 0x64f   : > { %s1771_s12 = scalar_lea.hbm %s2324_s16, 256  ;;  %s1775_s25 = scalar_lea.hbm %s2417_s13, 512 }
 0x650   : > { %p1772_p5 = scmp.ne.s32.totalorder %s2324_s16, %s1771_s12  ;;  %p1776_p9 = scmp.lt.u32.totalorder %s2324_s16, %s2417_s13 }
 0x651   : > { %p1777_p12 = scmp.lt.u32.totalorder %s1775_s25, %s1771_s12  ;;  %p1779_p1 = scmp.lt.u32.totalorder %s1771_s12, %s2324_s16 }
 0x652   : > { %p1773_p7 = pnand %p1772_p5, %p2418_p3 }
 0x653   : > { %p1778_p13 = por %p1777_p12, %p1776_p9 }
 0x654   : > { %p1774_p6 = pneg %p1773_p7 }
 0x655   : > { %p1780_p2 = por %p1779_p1, %p1778_p13 }
 0x657   : > { %p1781_p8 = pnand %p1780_p2, %p1774_p6 }
 0x659   : > { %1784 = shalt.err (!%p1781_p8)
}
 0x65a   : > { %s1861_s23 = smov 128   ;;  %s1862_s30 = smov 8  }
 0x65b   : > { %1307 = dma.vmem_to_hbm [thread:$0]  (%p2418_p3), %s2319_s26, 256, %s2324_s16, %s944_s15, %s1861_s23, %s1861_s23, %s1862_s30  }
 0x65c PF: > { %s972_s28 = sand.u32 1, %s1831_s17   ;;  %p2419_p4 = scmp.ne.s32.totalorder %s2400_s0, 0 }
 0x65d   : > { %p2420_p10 = scmp.ge.s32.totalorder %s1843_s20, 2  ;;  %s973_s12 = scalar_lea.sflag [#allocation4], %s972_s28 }
 0x65f   : > { %p1345_p11 = pnand %p2420_p10, %p2419_p4 }
 0x661   : > { %1826 = dma.done.wait (!%p1345_p11), %s973_s12, 256  }
 0x662   : > { %1828 = vsyncadd (!%p1345_p11), %s973_s12, 4294967040  ;;  %p29_p0 = scmp.ge.s32.totalorder %s2181_s27, 4   ;;  %s2421_s17 = smov %s1835_s18 }
 0x663   : > { %s2422_s18 = smov %s1839_s19  ;;  %s2423_s19 = smov %s2192_s29 }
 0x664   : > { %s2424_s20 = smov %s2181_s27  ;;  %31 = sbr.rel (!%p29_p0) target bundleno = 14 (0xe), region = 149 }
 0x66b   :  { %978 = vsyncpa [#allocation3], 1 }
 0x66c   :  { %980 = vsyncpa [#allocation3 + $0x1], 1 }
 0x66d   :  { %981 = vsyncpa [#allocation6], 1 }
 0x66e   :  { %982 = vsyncpa [#allocation9], 1 }
 0x66f   :  { %983 = vsyncpa [#allocation12], 1 }
 0x670   :  { %984 = vsyncpa [#allocation15], 1 }
 0x671   :  { %985 = vsyncpa [#allocation18], 1 }
 0x672   :  { %986 = vsyncpa [#allocation4], 1 }
 0x673   :  { %988 = vsyncpa [#allocation4 + $0x1], 1 }

</bundles_post_ra>
